<compile_context>
chip_gen: v6e
topology: v6e:2x2x1
jax: 0.10.0
libtpu: 0.0.40
codegen_flags: <defaults>
</compile_context>

<pallas_src>
import functools

import jax
import jax.numpy as jnp
from jax.experimental import pallas as pl
from jax.experimental.pallas import tpu as pltpu

_LANES = 128
_SUBLANES = 8
_CHUNK_ROWS = 512                     # (512, 128) f32 sub-chunk per accumulation step
_MAX_TILE_ROWS = 8192                 # (8192, 128) f32 tile = 4 MiB per input per buffer
_VMEM_LIMIT_BYTES = 40 * (1 << 20)    # 16 MiB double-buffered inputs + headroom


def _round_up(x, m):
    return ((x + m - 1) // m) * m


def _mse_kernel(pred_ref, real_ref, out_ref, *, tile_rows, valid_rows, steps, needs_mask):
    """Accumulate sum((real - pred)^2) into a resident (8, 128) partial-sum block."""
    c = pl.program_id(0)   # parallel outer axis (TensorCore split on v7x)
    i = pl.program_id(1)   # arbitrary (reduction) inner axis

    @pl.when(i == 0)
    def _():
        out_ref[...] = jnp.zeros_like(out_ref)

    blk = c * steps + i                 # logical (unclamped) block index
    n_full = tile_rows // _CHUNK_ROWS   # full 512-row chunks per tile
    rem = tile_rows % _CHUNK_ROWS       # remainder chunk (multiple of 8 rows)

    def chunk_sum(start, size, masked, acc):
        p = pred_ref[pl.ds(start, size), :].astype(jnp.float32)
        r = real_ref[pl.ds(start, size), :].astype(jnp.float32)
        d = r - p
        dd = d * d
        if masked:
            row = (blk * tile_rows + start
                   + jax.lax.broadcasted_iota(jnp.int32, dd.shape, 0))
            dd = jnp.where(row < valid_rows, dd, jnp.float32(0.0))
        # Pure-VPU fold of the sublane-block dim down to one (8, 128) tile; the
        # XLU cross-lane reduce is deferred to the tiny wrapper epilogue.
        return acc + dd.reshape(size // _SUBLANES, _SUBLANES, _LANES).sum(axis=0)

    def tile_sum(masked):
        acc = jnp.zeros((_SUBLANES, _LANES), jnp.float32)
        if n_full > 0:
            def body(k, a):
                s = k * _CHUNK_ROWS
                if isinstance(s, jax.Array):
                    s = pl.multiple_of(s, _CHUNK_ROWS)
                return chunk_sum(s, _CHUNK_ROWS, masked, a)
            acc = jax.lax.fori_loop(0, n_full, body, acc, unroll=True)
        if rem:
            acc = chunk_sum(n_full * _CHUNK_ROWS, rem, masked, acc)
        return acc

    if needs_mask:
        # Only blocks extending past valid_rows pay for iota/compare/select;
        # all other steps stay purely sub/mul/add.
        is_partial = (blk + 1) * tile_rows > valid_rows

        @pl.when(is_partial)
        def _():
            out_ref[...] += tile_sum(True)

        @pl.when(jnp.logical_not(is_partial))
        def _():
            out_ref[...] += tile_sum(False)
    else:
        out_ref[...] += tile_sum(False)


def mse_pallas(pred, real):
    """Pallas equivalent of torch: sum((real - pred)**2) / numel."""
    assert pred.shape == real.shape, "pred/real shape mismatch"
    n = pred.size
    if n == 0:
        return jnp.float32(0.0)

    pred_f = pred.reshape(-1)
    real_f = real.reshape(-1)

    # Pad-free tail: kernel streams the 1024-aligned prefix (free reshape, no copy
    # in the common case); the <1024-element remainder is a tiny XLA sum.
    pad_unit = _SUBLANES * _LANES
    n_aligned = n - (n % pad_unit)
    if n_aligned < n:
        td = (real_f[n_aligned:].astype(jnp.float32)
              - pred_f[n_aligned:].astype(jnp.float32))
        tail_sum = jnp.sum(td * td)
        pred_main = pred_f[:n_aligned]
        real_main = real_f[:n_aligned]
    else:
        tail_sum = jnp.float32(0.0)
        pred_main = pred_f
        real_main = real_f

    if n_aligned == 0:
        return tail_sum / jnp.float32(n)

    rows = n_aligned // _LANES          # multiple of 8
    pred2 = pred_main.reshape(rows, _LANES)
    real2 = real_main.reshape(rows, _LANES)

    # Tile / grid selection: biggest lane-dense tiles within the VMEM budget and,
    # whenever there is more than one block, an even block count so the parallel
    # outer axis always splits 2-ways across v7x's TensorCores.
    n_blocks0 = pl.cdiv(rows, _MAX_TILE_ROWS)
    if n_blocks0 >= 2:
        n_outer = 2
        n_blocks = n_blocks0 + (n_blocks0 % 2)
        tile_rows = min(_round_up(pl.cdiv(rows, n_blocks), _SUBLANES), _MAX_TILE_ROWS)
    else:
        n_outer = 1
        n_blocks = 1
        tile_rows = rows                # single full-extent block
    steps = n_blocks // n_outer
    needs_mask = (tile_rows * n_blocks != rows)

    # Trailing grid blocks may start past the end of the data (even-split rounding);
    # clamp their DMA window to the last real block -- their contribution is zeroed
    # by the in-kernel row mask (never rely on OOB DMA windows).
    last_data_block = (rows - 1) // tile_rows

    def in_index_map(c, i):
        return (jnp.minimum(c * steps + i, last_data_block), 0)

    kernel = functools.partial(
        _mse_kernel,
        tile_rows=tile_rows,
        valid_rows=rows,
        steps=steps,
        needs_mask=needs_mask,
    )

    itemsize = jnp.dtype(pred2.dtype).itemsize
    partials = pl.pallas_call(
        kernel,
        out_shape=jax.ShapeDtypeStruct((n_outer * _SUBLANES, _LANES), jnp.float32),
        grid_spec=pltpu.PrefetchScalarGridSpec(
            num_scalar_prefetch=0,
            grid=(n_outer, steps),
            in_specs=[
                pl.BlockSpec((tile_rows, _LANES), in_index_map),
                pl.BlockSpec((tile_rows, _LANES), in_index_map),
            ],
            # One resident partial-sum block per outer index (no cross-core race).
            out_specs=pl.BlockSpec((_SUBLANES, _LANES), lambda c, i: (c, 0)),
        ),
        compiler_params=pltpu.CompilerParams(
            dimension_semantics=("parallel", "arbitrary"),
            vmem_limit_bytes=_VMEM_LIMIT_BYTES,
        ),
        cost_estimate=pl.CostEstimate(
            flops=3 * rows * _LANES,
            transcendentals=0,
            bytes_accessed=2 * rows * _LANES * itemsize
            + 4 * n_outer * _SUBLANES * _LANES,
        ),
    )(pred2, real2)

    # Tiny epilogue: final cross-lane reduce of the partials + tail + 1/n scale.
    # TODO(synk): optionally fold this reduce into the kernel's last grid step.
    return (jnp.sum(partials) + tail_sum) * jnp.float32(1.0 / float(n))


def mse_ref(pred, real):
    d = real.astype(jnp.float32) - pred.astype(jnp.float32)
    return jnp.sum(d * d) / d.size


if __name__ == "__main__":
    key = jax.random.PRNGKey(0)
    k1, k2 = jax.random.split(key)

    # 1) Small NCHW-shaped inputs as the PyTorch module would receive.
    shape = (2, 4, 16, 16)
    pred = jax.random.normal(k1, shape, dtype=jnp.float32)
    real = jax.random.normal(k2, shape, dtype=jnp.float32)
    out = jax.block_until_ready(mse_pallas(pred, real))
    ref = mse_ref(pred, real)
    assert jnp.allclose(out, ref, rtol=1e-4, atol=1e-6), (out, ref)

    # 2) Odd native block count -> forced even 2-way split (exact cover, no mask).
    shape2 = (4, 4, 400, 400)  # 2,560,000 elems -> 20000 rows -> 4 blocks of 5000
    pred2 = jax.random.normal(k1, shape2, dtype=jnp.float32)
    real2 = jax.random.normal(k2, shape2, dtype=jnp.float32)
    out2 = jax.block_until_ready(mse_pallas(pred2, real2))
    ref2 = mse_ref(pred2, real2)
    assert jnp.allclose(out2, ref2, rtol=1e-4, atol=1e-6), (out2, ref2)

    # 3) Multi-block with a partial (masked) last block + 2-way split.
    shape3 = (8200, 1024)      # 8,396,800 elems -> 8200 rows -> 2 blocks of 4104
    pred3 = jax.random.normal(k1, shape3, dtype=jnp.float32)
    real3 = jax.random.normal(k2, shape3, dtype=jnp.float32)
    out3 = jax.block_until_ready(mse_pallas(pred3, real3))
    ref3 = mse_ref(pred3, real3)
    assert jnp.allclose(out3, ref3, rtol=1e-4, atol=1e-6), (out3, ref3)

    # 4) Misaligned size (n % 1024 != 0): pad-free prefix kernel + tiny XLA tail.
    shape4 = (3, 5, 7, 11)     # 1155 elems -> 8 aligned rows + 131-element tail
    pred4 = jax.random.normal(k1, shape4, dtype=jnp.float32)
    real4 = jax.random.normal(k2, shape4, dtype=jnp.float32)
    out4 = jax.block_until_ready(mse_pallas(pred4, real4))
    ref4 = mse_ref(pred4, real4)
    assert jnp.allclose(out4, ref4, rtol=1e-4, atol=1e-6), (out4, ref4)

    print("KERNEL_OK")
</pallas_src>

<mosaic_0001>
module attributes {stable_mosaic.version = 11 : i64} {
  func.func @_mse_kernel(%arg0: i32, %arg1: i32, %arg2: memref<16x128xf32, #tpu.memory_space<vmem>>, %arg3: memref<16x128xf32, #tpu.memory_space<vmem>>, %arg4: memref<8x128xf32, #tpu.memory_space<vmem>>) attributes {dimension_semantics = [#tpu.dimension_semantics<parallel>, #tpu.dimension_semantics<arbitrary>], iteration_bounds = array<i64: 1, 1>, scalar_prefetch = 0 : i64, scratch_operands = 0 : i64, tpu.core_type = #tpu.core_type<tc>, window_params = [{transform_indices = @transform_0, window_bounds = array<i64: 16, 128>}, {transform_indices = @transform_1, window_bounds = array<i64: 16, 128>}, {transform_indices = @transform_2, window_bounds = array<i64: 8, 128>}]} {
    %c0_i32 = arith.constant 0 : i32
    %0 = arith.cmpi eq, %arg1, %c0_i32 : i32
    %1 = arith.extui %0 : i1 to i32
    %c0_i32_0 = arith.constant 0 : i32
    %2 = arith.cmpi ne, %1, %c0_i32_0 : i32
    scf.if %2 {
      %cst_9 = arith.constant 0.000000e+00 : f32
      %14 = vector.broadcast %cst_9 : f32 to vector<8x128xf32>
      %c0_10 = arith.constant 0 : index
      %c0_11 = arith.constant 0 : index
      %15 = vector.load %arg4[%c0_10, %c0_11] : memref<8x128xf32, #tpu.memory_space<vmem>>, vector<8x128xf32>
      tpu.vector_store %arg4[%c0_10, %c0_11], %14 {strides = array<i32>} : memref<8x128xf32, #tpu.memory_space<vmem>>, vector<8x128xf32>,
    } else {
    }
    %c0 = arith.constant 0 : index
    %c0_1 = arith.constant 0 : index
    %3 = vector.load %arg4[%c0, %c0_1] : memref<8x128xf32, #tpu.memory_space<vmem>>, vector<8x128xf32>
    %cst = arith.constant 0.000000e+00 : f32
    %4 = vector.broadcast %cst : f32 to vector<8x128xf32>
    %c0_2 = arith.constant 0 : index
    %c0_3 = arith.constant 0 : index
    %5 = vector.load %arg2[%c0_2, %c0_3] : memref<16x128xf32, #tpu.memory_space<vmem>>, vector<16x128xf32>
    %c0_4 = arith.constant 0 : index
    %c0_5 = arith.constant 0 : index
    %6 = vector.load %arg3[%c0_4, %c0_5] : memref<16x128xf32, #tpu.memory_space<vmem>>, vector<16x128xf32>
    %7 = arith.subf %6, %5 : vector<16x128xf32>
    %8 = arith.mulf %7, %7 : vector<16x128xf32>
    %9 = vector.shape_cast %8 : vector<16x128xf32> to vector<2x8x128xf32>
    %cst_6 = arith.constant dense<0.000000e+00> : vector<8x128xf32>
    %10 = vector.multi_reduction <add>, %9, %cst_6 [0] : vector<2x8x128xf32> to vector<8x128xf32>
    %11 = arith.addf %4, %10 : vector<8x128xf32>
    %12 = arith.addf %3, %11 : vector<8x128xf32>
    %c0_7 = arith.constant 0 : index
    %c0_8 = arith.constant 0 : index
    %13 = vector.load %arg4[%c0_7, %c0_8] : memref<8x128xf32, #tpu.memory_space<vmem>>, vector<8x128xf32>
    tpu.vector_store %arg4[%c0_7, %c0_8], %12 {strides = array<i32>} : memref<8x128xf32, #tpu.memory_space<vmem>>, vector<8x128xf32>,
    return
  }
  func.func @transform_0(%arg0: i32, %arg1: i32) -> (i32, i32) {
    %c1_i32 = arith.constant 1 : i32
    %0 = arith.muli %arg0, %c1_i32 : i32
    %1 = arith.addi %0, %arg1 : i32
    %c0_i32 = arith.constant 0 : i32
    %2 = arith.minsi %1, %c0_i32 : i32
    %c0_i32_0 = arith.constant 0 : i32
    %c0_i32_1 = arith.constant 0 : i32
    return %2, %c0_i32_0 : i32, i32
  }
  func.func @transform_1(%arg0: i32, %arg1: i32) -> (i32, i32) {
    %c1_i32 = arith.constant 1 : i32
    %0 = arith.muli %arg0, %c1_i32 : i32
    %1 = arith.addi %0, %arg1 : i32
    %c0_i32 = arith.constant 0 : i32
    %2 = arith.minsi %1, %c0_i32 : i32
    %c0_i32_0 = arith.constant 0 : i32
    %c0_i32_1 = arith.constant 0 : i32
    return %2, %c0_i32_0 : i32, i32
  }
  func.func @transform_2(%arg0: i32, %arg1: i32) -> (i32, i32) {
    %c0_i32 = arith.constant 0 : i32
    %c0_i32_0 = arith.constant 0 : i32
    return %arg0, %c0_i32 : i32, i32
  }
}

</mosaic_0001>

<bundles_post_ra>
// kernel: tpu_custom_call.1
= control target key start
LH: loop header
LB: loop body
LE: loop exit
PB: predicated region body
PF: predicated region fallthrough
CT: control target
= control target key end

     0   :  { %7 = vsyncpa [#allocation3], 0  ;;  %s199_s0 = inlined_call_operand.hbm [shape: f32[16,128], index: 0, kind: input, shape index: {}]   ;;  %s200_s1 = inlined_call_operand.hbm [shape: f32[16,128], index: 1, kind: input, shape index: {}]   ;;  %s201_s2 = inlined_call_operand.hbm [shape: f32[8,128], index: 2, kind: output, shape index: {}]  }
   0x1   :  { %8 = vsyncpa [#allocation6], 0 }
   0x2   :  { %9 = vsyncpa [#allocation4], 0  ;;  %s170_s9 = smov [#allocation2]  }
   0x3   :  { %s21_s10 = sshll.u32 %s170_s9, 4  ;;  %s22_s10 = int_to_ptr.vmem [resolvable:$true] %s21_s10 }
   0x4   :  { %s112_s11 = scalar_lea.vmem %s22_s10, 256  ;;  %p117_p1 = scmp.lt.s32.totalorder %s22_s10, %s22_s10 }
   0x5   :  { %p113_p0 = scmp.ne.s32.totalorder %s22_s10, %s112_s11  ;;  %p118_p2 = scmp.lt.s32.totalorder %s112_s11, %s112_s11 }
   0x7   :  { %p119_p3 = por %p118_p2, %p117_p1 }
   0x9   :  { %p120_p4 = pnand %p119_p3, %p113_p0 }
   0xb   :  { %123 = shalt.err (!%p120_p4)
}
   0xc   :  { %s171_s12 = smov 128   ;;  %s172_s13 = smov 8  }
   0xd   :  { %27 = dma.hbm_to_vmem [thread:$0]  %s199_s0, 256, %s22_s10, [#allocation3], %s171_s12, %s171_s12, %s172_s13  }
   0xe   :  { %s173_s16 = smov [#allocation5]  }
   0xf   :  { %s39_s17 = sshll.u32 %s173_s16, 4  ;;  %s40_s17 = int_to_ptr.vmem [resolvable:$true] %s39_s17 }
  0x10   :  { %s132_s18 = scalar_lea.vmem %s40_s17, 256  ;;  %p137_p6 = scmp.lt.s32.totalorder %s40_s17, %s40_s17 }
  0x11   :  { %p133_p5 = scmp.ne.s32.totalorder %s40_s17, %s132_s18  ;;  %p138_p7 = scmp.lt.s32.totalorder %s132_s18, %s132_s18 }
  0x13   :  { %p139_p8 = por %p138_p7, %p137_p6 }
  0x15   :  { %p140_p9 = pnand %p139_p8, %p133_p5 }
  0x17   :  { %143 = shalt.err (!%p140_p9)
}
  0x18   :  { %45 = dma.hbm_to_vmem [thread:$0]  %s200_s1, 256, %s40_s17, [#allocation6], %s171_s12, %s171_s12, %s172_s13  }
  0x19   :  { %164 = dma.done.wait [#allocation3], 256  }
  0x1a   :  { %165 = vsyncadd [#allocation3], 4294967040 }
  0x1b   :  { %166 = dma.done.wait [#allocation6], 256  }
  0x1c   :  { %167 = vsyncadd [#allocation6], 4294967040  ;;  %v66_v0 = vld [vmem:[#allocation2] sm:$0xff]  ;;  %v67_v1 = vld [vmem:[#allocation2 + $0x8] sm:$0xff]  ;;  %s174_s0 = smov [#allocation7]  }
  0x1d   :  { %v68_v2 = vld [vmem:[#allocation5] sm:$0xff]  ;;  %v69_v3 = vld [vmem:[#allocation5 + $0x8] sm:$0xff]  ;;  %s84_s21 = sshll.u32 %s174_s0, 4  ;;  %s85_s21 = int_to_ptr.vmem [resolvable:$true] %s84_s21 }
  0x1e   :  { %v70_v4 = vsub.f32 %v68_v2, %v66_v0  ;;  %v71_v5 = vsub.f32 %v69_v3, %v67_v1  ;;  %s144_s22 = scalar_lea.vmem %s85_s21, 128  ;;  %p149_p11 = scmp.lt.s32.totalorder %s85_s21, %s85_s21 }
  0x1f   :  { %p145_p10 = scmp.ne.s32.totalorder %s85_s21, %s144_s22  ;;  %p150_p12 = scmp.lt.s32.totalorder %s144_s22, %s144_s22 }
  0x20   :  { %v72_v6 = vmul.f32 %v70_v4, %v70_v4  ;;  %v73_v7 = vmul.f32 %v71_v5, %v71_v5 }
  0x21   :  { %p151_p13 = por %p150_p12, %p149_p11 }
  0x22   :  { %v74_v8 = vadd.f32 %v73_v7, %v72_v6 }
  0x23   :  { %p152_p0 = pnand %p151_p13, %p145_p10 }
  0x24   :  { %77 = vst [vmem:[#allocation7] sm:$0xff] %v74_v8 }
  0x25   :  { %155 = shalt.err (!%p152_p0)
}
  0x26   :  { %87 = dma.vmem_to_hbm [thread:$0]  %s85_s21, 128, %s201_s2, [#allocation4]  }
  0x27   :  { %168 = dma.done.wait [#allocation4], 128  }
  0x28   :  { %169 = vsyncadd [#allocation4], 4294967168 }
  0x29   :  { %91 = vsyncpa [#allocation3], 1 }
  0x2a   :  { %92 = vsyncpa [#allocation6], 1 }
  0x2b   :  { %93 = vsyncpa [#allocation4], 1 }

</bundles_post_ra>
